<compile_context>
chip_gen: v5e
topology: v5e:2x2
jax: 0.10.0
libtpu: 0.0.40
codegen_flags: <defaults>
</compile_context>

<pallas_src>
import numpy as np
import jax
import jax.numpy as jnp
from jax.experimental import pallas as pl
from jax.experimental.pallas import tpu as pltpu


# --------------------------------------------------------------------------
# Host-side (numpy) construction of the pooling matrices -> XLA constants.
# --------------------------------------------------------------------------
def _window_matrix_onnx(in_size: int, out_size: int) -> np.ndarray:
    """onnx_AdaptiveAvgPool2d: fixed stride=floor(in/out), kernel=in-(out-1)*stride."""
    if in_size < out_size:
        raise ValueError(f"in_size ({in_size}) must be >= out_size ({out_size})")
    stride = in_size // out_size
    kernel = in_size - (out_size - 1) * stride
    mat = np.zeros((out_size, in_size), dtype=np.float32)
    for a in range(out_size):
        mat[a, a * stride:a * stride + kernel] = 1.0 / float(kernel)
    return mat


def _window_matrix_torch(in_size: int, out_size: int) -> np.ndarray:
    """torch adaptive_avg_pool2d: window [floor(a*in/out), ceil((a+1)*in/out))."""
    mat = np.zeros((out_size, in_size), dtype=np.float32)
    for a in range(out_size):
        s = (a * in_size) // out_size
        e = -(-((a + 1) * in_size) // out_size)  # ceil
        mat[a, s:e] = 1.0 / float(e - s)
    return mat


def _pool_matrix(h: int, w: int, oh: int, ow: int, mode: str) -> np.ndarray:
    """(H*W, OH*OW) f32 matrix implementing the adaptive avg pool as a matmul."""
    win = _window_matrix_onnx if mode == "onnx" else _window_matrix_torch
    ph = win(h, oh)                       # (OH, H) row-normalized
    pw = win(w, ow)                       # (OW, W) row-normalized
    return np.ascontiguousarray(np.kron(ph, pw).T)   # (H*W, OH*OW)


# --------------------------------------------------------------------------
# Fused kernel: n matmuls, each writing its channel slice of the output.
# --------------------------------------------------------------------------
def _make_fused_kernel(n_inputs, c_offsets, c_sizes):
    def kernel(*refs):
        # refs = (x_0..x_{n-1}, p_0..p_{n-1}, o_ref)
        o_ref = refs[-1]
        for i in range(n_inputs):
            x = refs[i][0]                   # (C_i, H_i*W_i)  lane-dense K
            p = refs[n_inputs + i][...]      # (H_i*W_i, OH*OW)
            res = jnp.dot(x, p, preferred_element_type=jnp.float32)
            off = c_offsets[i]
            o_ref[0, off:off + c_sizes[i], :] = res.astype(o_ref.dtype)
    return kernel


class HFAMPallas:
    """JAX/Pallas equivalent of H_FAM(stride, pool_mode) (both 'onnx' and 'torch')."""

    def __init__(self, stride: int, pool_mode: str = "onnx"):
        if pool_mode not in ("onnx", "torch"):
            raise ValueError(f"unknown pool_mode {pool_mode!r}")
        self.stride = stride
        self.pool_mode = pool_mode

    def __call__(self, inputs):
        B = inputs[0].shape[0]
        _, _, h_last, w_last = inputs[-1].shape
        oh = (h_last - 1) // self.stride + 1
        ow = (w_last - 1) // self.stride + 1
        ohow = oh * ow
        out_dtype = inputs[0].dtype

        xs_flat, ps, c_sizes = [], [], []
        for x in inputs:
            b, c, h, w = x.shape
            assert b == B, "all inputs must share the batch dim"
            xs_flat.append(x.reshape(b, c, h * w))          # free, contiguous
            # Precompute on host, cast to the input dtype for the native MXU path
            # (accumulation is forced to f32 inside the kernel).
            ps.append(jnp.asarray(_pool_matrix(h, w, oh, ow, self.pool_mode),
                                  dtype=x.dtype))
            c_sizes.append(c)

        c_offsets, off = [], 0
        for c in c_sizes:
            c_offsets.append(off)
            off += c
        c_total = off

        kernel = _make_fused_kernel(len(inputs), tuple(c_offsets), tuple(c_sizes))

        in_specs = [
            pl.BlockSpec((1, xf.shape[1], xf.shape[2]), lambda b: (b, 0, 0))
            for xf in xs_flat
        ] + [
            pl.BlockSpec(p.shape, lambda b: (0, 0))          # resident across steps
            for p in ps
        ]

        out_flat = pl.pallas_call(
            kernel,
            out_shape=jax.ShapeDtypeStruct((B, c_total, ohow), out_dtype),
            grid=(B,),
            in_specs=in_specs,
            out_specs=pl.BlockSpec((1, c_total, ohow), lambda b: (b, 0, 0)),
            compiler_params=pltpu.CompilerParams(
                dimension_semantics=("parallel",)),
        )(*xs_flat, *ps)

        return out_flat.reshape(B, c_total, oh, ow)          # free split of last dim


# --------------------------------------------------------------------------
# Pure-JAX references (independent of the matmul formulation above).
# --------------------------------------------------------------------------
def _ref_pool_exact(x, oh, ow):
    """Exact reference when the spatial dims divide the output ('onnx'=='torch')."""
    B, C, H, W = x.shape
    sh, sw = H // oh, W // ow
    return x.reshape(B, C, oh, sh, ow, sw).mean(axis=(3, 5))


def _ref_pool_onnx(x, oh, ow):
    B, C, H, W = x.shape
    sh, sw = H // oh, W // ow
    kh, kw = H - (oh - 1) * sh, W - (ow - 1) * sw
    rows = []
    for a in range(oh):
        cols = []
        for b in range(ow):
            cols.append(x[:, :, a * sh:a * sh + kh, b * sw:b * sw + kw].mean(axis=(2, 3)))
        rows.append(jnp.stack(cols, axis=-1))
    return jnp.stack(rows, axis=-2)


def _ref_pool_torch(x, oh, ow):
    B, C, H, W = x.shape
    rows = []
    for a in range(oh):
        h0, h1 = (a * H) // oh, -(-((a + 1) * H) // oh)
        cols = []
        for b in range(ow):
            w0, w1 = (b * W) // ow, -(-((b + 1) * W) // ow)
            cols.append(x[:, :, h0:h1, w0:w1].mean(axis=(2, 3)))
        rows.append(jnp.stack(cols, axis=-1))
    return jnp.stack(rows, axis=-2)


if __name__ == "__main__":
    key = jax.random.PRNGKey(0)
    k0, k1, k2, k3, k4 = jax.random.split(key, 5)

    # ---- Main check: default 'onnx' mode, divisible shapes (exact reference) ----
    x0 = jax.random.normal(k0, (2, 4, 32, 32), dtype=jnp.float32)
    x1 = jax.random.normal(k1, (2, 8, 16, 16), dtype=jnp.float32)
    x2 = jax.random.normal(k2, (2, 16, 16, 16), dtype=jnp.float32)
    inputs = [x0, x1, x2]

    module = HFAMPallas(stride=2, pool_mode="onnx")
    out = jax.block_until_ready(module(inputs))

    ref = jnp.concatenate(
        [_ref_pool_exact(x0, 8, 8), _ref_pool_exact(x1, 8, 8), _ref_pool_exact(x2, 8, 8)],
        axis=1,
    )
    assert out.shape == (2, 4 + 8 + 16, 8, 8), out.shape
    assert jnp.allclose(out, ref, atol=1e-5, rtol=1e-5), "onnx-mode mismatch vs reference"

    # ---- Secondary check: non-divisible shapes, both pool modes ----
    y0 = jax.random.normal(k3, (2, 4, 20, 20), dtype=jnp.float32)
    y1 = jax.random.normal(k4, (2, 6, 10, 10), dtype=jnp.float32)
    yin = [y0, y1]
    oh = ow = (10 - 1) // 3 + 1                                    # = 4 (10 not divisible)

    out_onnx = jax.block_until_ready(HFAMPallas(stride=3, pool_mode="onnx")(yin))
    ref_onnx = jnp.concatenate([_ref_pool_onnx(y0, oh, ow), _ref_pool_onnx(y1, oh, ow)], axis=1)
    assert out_onnx.shape == (2, 10, 4, 4), out_onnx.shape
    assert jnp.allclose(out_onnx, ref_onnx, atol=1e-5, rtol=1e-5), "onnx-mode (ragged) mismatch"

    out_t = jax.block_until_ready(HFAMPallas(stride=3, pool_mode="torch")(yin))
    ref_t = jnp.concatenate([_ref_pool_torch(y0, oh, ow), _ref_pool_torch(y1, oh, ow)], axis=1)
    assert jnp.allclose(out_t, ref_t, atol=1e-5, rtol=1e-5), "torch-mode mismatch"

    print("KERNEL_OK")
</pallas_src>

<mosaic_0001>
module attributes {stable_mosaic.version = 11 : i64} {
  func.func @kernel(%arg0: i32, %arg1: memref<1x4x1024xf32, #tpu.memory_space<vmem>>, %arg2: memref<1x8x256xf32, #tpu.memory_space<vmem>>, %arg3: memref<1x16x256xf32, #tpu.memory_space<vmem>>, %arg4: memref<1024x64xf32, #tpu.memory_space<vmem>>, %arg5: memref<256x64xf32, #tpu.memory_space<vmem>>, %arg6: memref<256x64xf32, #tpu.memory_space<vmem>>, %arg7: memref<1x28x64xf32, #tpu.memory_space<vmem>>) attributes {dimension_semantics = [#tpu.dimension_semantics<parallel>], iteration_bounds = array<i64: 2>, scalar_prefetch = 0 : i64, scratch_operands = 0 : i64, tpu.core_type = #tpu.core_type<tc>, window_params = [{transform_indices = @transform_0, window_bounds = array<i64: 1, 4, 1024>}, {transform_indices = @transform_1, window_bounds = array<i64: 1, 8, 256>}, {transform_indices = @transform_2, window_bounds = array<i64: 1, 16, 256>}, {pipeline_mode = #tpu.pipeline_mode<synchronous>, transform_indices = @transform_3, window_bounds = array<i64: 1024, 64>}, {pipeline_mode = #tpu.pipeline_mode<synchronous>, transform_indices = @transform_4, window_bounds = array<i64: 256, 64>}, {pipeline_mode = #tpu.pipeline_mode<synchronous>, transform_indices = @transform_5, window_bounds = array<i64: 256, 64>}, {transform_indices = @transform_6, window_bounds = array<i64: 1, 28, 64>}]} {
    %c0 = arith.constant 0 : index
    %c0_0 = arith.constant 0 : index
    %c0_1 = arith.constant 0 : index
    %0 = vector.load %arg1[%c0, %c0_0, %c0_1] : memref<1x4x1024xf32, #tpu.memory_space<vmem>>, vector<1x4x1024xf32>
    %1 = vector.shape_cast %0 : vector<1x4x1024xf32> to vector<4x1024xf32>
    %c0_2 = arith.constant 0 : index
    %c0_3 = arith.constant 0 : index
    %2 = vector.load %arg4[%c0_2, %c0_3] : memref<1024x64xf32, #tpu.memory_space<vmem>>, vector<1024x64xf32>
    %cst = arith.constant dense<0.000000e+00> : vector<4x64xf32>
    %3 = tpu.matmul %1, %2, %cst {dimension_numbers = #tpu.dot_dimension_numbers<[1], [0], [0], [1], [0, 0, 1, 1], [], []>} : vector<4x1024xf32>, vector<1024x64xf32>, vector<4x64xf32> -> vector<4x64xf32>
    %c0_4 = arith.constant 0 : index
    %c0_5 = arith.constant 0 : index
    %c0_6 = arith.constant 0 : index
    %4 = vector.load %arg7[%c0_4, %c0_5, %c0_6] : memref<1x28x64xf32, #tpu.memory_space<vmem>>, vector<1x4x64xf32>
    %5 = vector.shape_cast %4 : vector<1x4x64xf32> to vector<4x64xf32>
    %6 = vector.shape_cast %3 : vector<4x64xf32> to vector<1x4x64xf32>
    tpu.vector_store %arg7[%c0_4, %c0_5, %c0_6], %6 {strides = array<i32>} : memref<1x28x64xf32, #tpu.memory_space<vmem>>, vector<1x4x64xf32>,
    %c0_7 = arith.constant 0 : index
    %c0_8 = arith.constant 0 : index
    %c0_9 = arith.constant 0 : index
    %7 = vector.load %arg2[%c0_7, %c0_8, %c0_9] : memref<1x8x256xf32, #tpu.memory_space<vmem>>, vector<1x8x256xf32>
    %8 = vector.shape_cast %7 : vector<1x8x256xf32> to vector<8x256xf32>
    %c0_10 = arith.constant 0 : index
    %c0_11 = arith.constant 0 : index
    %9 = vector.load %arg5[%c0_10, %c0_11] : memref<256x64xf32, #tpu.memory_space<vmem>>, vector<256x64xf32>
    %cst_12 = arith.constant dense<0.000000e+00> : vector<8x64xf32>
    %10 = tpu.matmul %8, %9, %cst_12 {dimension_numbers = #tpu.dot_dimension_numbers<[1], [0], [0], [1], [0, 0, 1, 1], [], []>} : vector<8x256xf32>, vector<256x64xf32>, vector<8x64xf32> -> vector<8x64xf32>
    %c0_13 = arith.constant 0 : index
    %c4 = arith.constant 4 : index
    %c0_14 = arith.constant 0 : index
    %11 = vector.load %arg7[%c0_13, %c4, %c0_14] : memref<1x28x64xf32, #tpu.memory_space<vmem>>, vector<1x8x64xf32>
    %12 = vector.shape_cast %11 : vector<1x8x64xf32> to vector<8x64xf32>
    %13 = vector.shape_cast %10 : vector<8x64xf32> to vector<1x8x64xf32>
    tpu.vector_store %arg7[%c0_13, %c4, %c0_14], %13 {strides = array<i32>} : memref<1x28x64xf32, #tpu.memory_space<vmem>>, vector<1x8x64xf32>,
    %c0_15 = arith.constant 0 : index
    %c0_16 = arith.constant 0 : index
    %c0_17 = arith.constant 0 : index
    %14 = vector.load %arg3[%c0_15, %c0_16, %c0_17] : memref<1x16x256xf32, #tpu.memory_space<vmem>>, vector<1x16x256xf32>
    %15 = vector.shape_cast %14 : vector<1x16x256xf32> to vector<16x256xf32>
    %c0_18 = arith.constant 0 : index
    %c0_19 = arith.constant 0 : index
    %16 = vector.load %arg6[%c0_18, %c0_19] : memref<256x64xf32, #tpu.memory_space<vmem>>, vector<256x64xf32>
    %cst_20 = arith.constant dense<0.000000e+00> : vector<16x64xf32>
    %17 = tpu.matmul %15, %16, %cst_20 {dimension_numbers = #tpu.dot_dimension_numbers<[1], [0], [0], [1], [0, 0, 1, 1], [], []>} : vector<16x256xf32>, vector<256x64xf32>, vector<16x64xf32> -> vector<16x64xf32>
    %c0_21 = arith.constant 0 : index
    %c12 = arith.constant 12 : index
    %c0_22 = arith.constant 0 : index
    %18 = vector.load %arg7[%c0_21, %c12, %c0_22] : memref<1x28x64xf32, #tpu.memory_space<vmem>>, vector<1x16x64xf32>
    %19 = vector.shape_cast %18 : vector<1x16x64xf32> to vector<16x64xf32>
    %20 = vector.shape_cast %17 : vector<16x64xf32> to vector<1x16x64xf32>
    tpu.vector_store %arg7[%c0_21, %c12, %c0_22], %20 {strides = array<i32>} : memref<1x28x64xf32, #tpu.memory_space<vmem>>, vector<1x16x64xf32>,
    return
  }
  func.func @transform_0(%arg0: i32) -> (i32, i32, i32) {
    %c0_i32 = arith.constant 0 : i32
    %c0_i32_0 = arith.constant 0 : i32
    %c0_i32_1 = arith.constant 0 : i32
    return %arg0, %c0_i32, %c0_i32_0 : i32, i32, i32
  }
  func.func @transform_1(%arg0: i32) -> (i32, i32, i32) {
    %c0_i32 = arith.constant 0 : i32
    %c0_i32_0 = arith.constant 0 : i32
    %c0_i32_1 = arith.constant 0 : i32
    return %arg0, %c0_i32, %c0_i32_0 : i32, i32, i32
  }
  func.func @transform_2(%arg0: i32) -> (i32, i32, i32) {
    %c0_i32 = arith.constant 0 : i32
    %c0_i32_0 = arith.constant 0 : i32
    %c0_i32_1 = arith.constant 0 : i32
    return %arg0, %c0_i32, %c0_i32_0 : i32, i32, i32
  }
  func.func @transform_3(%arg0: i32) -> (i32, i32) {
    %c0_i32 = arith.constant 0 : i32
    %c0_i32_0 = arith.constant 0 : i32
    %c0_i32_1 = arith.constant 0 : i32
    return %c0_i32, %c0_i32_0 : i32, i32
  }
  func.func @transform_4(%arg0: i32) -> (i32, i32) {
    %c0_i32 = arith.constant 0 : i32
    %c0_i32_0 = arith.constant 0 : i32
    %c0_i32_1 = arith.constant 0 : i32
    return %c0_i32, %c0_i32_0 : i32, i32
  }
  func.func @transform_5(%arg0: i32) -> (i32, i32) {
    %c0_i32 = arith.constant 0 : i32
    %c0_i32_0 = arith.constant 0 : i32
    %c0_i32_1 = arith.constant 0 : i32
    return %c0_i32, %c0_i32_0 : i32, i32
  }
  func.func @transform_6(%arg0: i32) -> (i32, i32, i32) {
    %c0_i32 = arith.constant 0 : i32
    %c0_i32_0 = arith.constant 0 : i32
    %c0_i32_1 = arith.constant 0 : i32
    return %arg0, %c0_i32, %c0_i32_0 : i32, i32, i32
  }
}

</mosaic_0001>

<bundles_post_ra>
// kernel: tpu_custom_call.1
= control target key start
LH: loop header
LB: loop body
LE: loop exit
PB: predicated region body
PF: predicated region fallthrough
CT: control target
= control target key end

     0   :  { %s922_s21 = smov 0   ;;  %s1552_s0 = inlined_call_operand.vmem [shape: f32[2,4,1024], index: 0, kind: input, shape index: {}]   ;;  %s1553_s1 = inlined_call_operand.vmem [shape: f32[2,8,256], index: 1, kind: input, shape index: {}]   ;;  %s1554_s2 = inlined_call_operand.vmem [shape: f32[2,16,256], index: 2, kind: input, shape index: {}]   ;;  %s1555_s3 = inlined_call_operand.vmem [shape: f32[1024,64], index: 3, kind: input, shape index: {}]   ;;  %s1556_s4 = inlined_call_operand.vmem [shape: f32[256,64], index: 4, kind: input, shape index: {}]   ;;  %s1557_s5 = inlined_call_operand.vmem [shape: f32[256,64], index: 5, kind: input, shape index: {}]   ;;  %s1558_s6 = inlined_call_operand.vmem [shape: f32[2,28,64], index: 6, kind: output, shape index: {}]  }
   0x1 LB: > { %s852_s22 = sadd.s32 4294967295, %s885_s21   ;;  %p856_p0 = scmp.ge.s32.totalorder %s885_s21, 1  ;;  %s885_s21 = sphi %s922_s21, %s16_s21  }
   0x2   : > { %p232_p1 = scmp.lt.s32.totalorder %s885_s21, 3 }
   0x4   : > { %p233_p2 = pnand %p856_p0, %p232_p1 }
   0x5   : > { %p1085_p3 = scmp.lt.s32.totalorder (!%p233_p2), %s852_s22, 1 }
   0x6   : > { %236 = sbr.rel (%p233_p2) target bundleno = 251 (0xfb), region = 44 }
   0xb   : > { %v343_v0 = vld [vmem:[%s1555_s3 + $0x178] sm:$0xff]  ;;  %v342_v2 = vld [vmem:[%s1555_s3 + $0x170] sm:$0xff]  ;;  %v341_v4 = vld [vmem:[%s1555_s3 + $0x168] sm:$0xff]  ;;  %s1561_s22 = smov (!%p1085_p3, %s852_s22), 1  ;;  %vm611_vm0 = vcmask 519168   ;;  %vm687_vm1 = vcmask 523264  }
   0xc   : > { %v359_v1 = vld [vmem:[%s1555_s3 + $0x1f8] sm:$0xff]  ;;  %491 = vmatpush.msra.mxu2 %v343_v0  ;;  %v358_v3 = vld [vmem:[%s1555_s3 + $0x1f0] sm:$0xff]  ;;  %v357_v5 = vld [vmem:[%s1555_s3 + $0x1e8] sm:$0xff]  ;;  %s1144_s26 = sshll.u32 %s1561_s22, 5  ;;  %s868_s19 = sshll.u32 %s1561_s22, 4 }
   0xd   : > { %511 = vmatpush.msra.mxu3 %v359_v1  ;;  %v311_v6 = vld [vmem:[%s1555_s3 + $0x78] sm:$0xff]  ;;  %v310_v7 = vld [vmem:[%s1555_s3 + $0x70] sm:$0xff]  ;;  %v340_v8 = vld [vmem:[%s1555_s3 + $0x160] sm:$0xff]  ;;  %s1168_s17 = scalar_lea.vmem %s1552_s0, %s1144_s26  ;;  %s1484_s15 = scalar_lea.vmem %s1554_s2, %s1144_s26 }
   0xe   : > { %492 = vmatpush.msra.mxu2 %v342_v2  ;;  %v356_v9 = vld [vmem:[%s1555_s3 + $0x1e0] sm:$0xff]  ;;  %451 = vmatpush.msra.mxu0 %v311_v6  ;;  %v327_v10 = vld [vmem:[%s1555_s3 + $0xf8] sm:$0xff]  ;;  %v309_v11 = vld [vmem:[%s1555_s3 + $0x68] sm:$0xff]  ;;  %s281_s22 = scalar_lea.vmem %s1553_s1, %s868_s19  ;;  %s291_s14 = scalar_lea.vmem %s1558_s6, %s1144_s26 }
   0xf   : > { %512 = vmatpush.msra.mxu3 %v358_v3  ;;  %v326_v12 = vld [vmem:[%s1555_s3 + $0xf0] sm:$0xff]  ;;  %v339_v13 = vld [vmem:[%s1555_s3 + $0x158] sm:$0xff]  ;;  %471 = vmatpush.msra.mxu1 %v327_v10  ;;  %v308_v15 = vld [vmem:[%s1555_s3 + $0x60] sm:$0xff] }
  0x10   : > { %493 = vmatpush.msra.mxu2 %v341_v4  ;;  %v355_v14 = vld [vmem:[%s1555_s3 + $0x1d8] sm:$0xff]  ;;  %452 = vmatpush.msra.mxu0 %v310_v7  ;;  %v325_v16 = vld [vmem:[%s1555_s3 + $0xe8] sm:$0xff]  ;;  %v338_v17 = vld [vmem:[%s1555_s3 + $0x150] sm:$0xff] }
  0x11   : > { %513 = vmatpush.msra.mxu3 %v357_v5  ;;  %v354_v18 = vld [vmem:[%s1555_s3 + $0x1d0] sm:$0xff]  ;;  %472 = vmatpush.msra.mxu1 %v326_v12  ;;  %v307_v19 = vld [vmem:[%s1555_s3 + $0x58] sm:$0xff]  ;;  %v324_v20 = vld [vmem:[%s1555_s3 + $0xe0] sm:$0xff] }
  0x12   : > { %494 = vmatpush.msra.mxu2 %v340_v8  ;;  %453 = vmatpush.msra.mxu0 %v309_v11  ;;  %v337_v21 = vld [vmem:[%s1555_s3 + $0x148] sm:$0xff]  ;;  %v306_v23 = vld [vmem:[%s1555_s3 + $0x50] sm:$0xff]  ;;  %v323_v24 = vld [vmem:[%s1555_s3 + $0xd8] sm:$0xff] }
  0x13   : > { %514 = vmatpush.msra.mxu3 %v356_v9  ;;  %v353_v22 = vld [vmem:[%s1555_s3 + $0x1c8] sm:$0xff]  ;;  %473 = vmatpush.msra.mxu1 %v325_v16  ;;  %v336_v25 = vld [vmem:[%s1555_s3 + $0x140] sm:$0xff]  ;;  %v322_v28 = vld [vmem:[%s1555_s3 + $0xd0] sm:$0xff] }
  0x14   : > { %495 = vmatpush.msra.mxu2 %v339_v13  ;;  %454 = vmatpush.msra.mxu0 %v308_v15  ;;  %v352_v26 = vld [vmem:[%s1555_s3 + $0x1c0] sm:$0xff]  ;;  %v305_v27 = vld [vmem:[%s1555_s3 + $0x48] sm:$0xff]  ;;  %v335_v29 = vld [vmem:[%s1555_s3 + $0x138] sm:$0xff] }
  0x15   : > { %515 = vmatpush.msra.mxu3 %v355_v14  ;;  %474 = vmatpush.msra.mxu1 %v324_v20  ;;  %v351_v30 = vld [vmem:[%s1555_s3 + $0x1b8] sm:$0xff]  ;;  %v304_v31 = vld [vmem:[%s1555_s3 + $0x40] sm:$0xff]  ;;  %v321_v32 = vld [vmem:[%s1555_s3 + $0xc8] sm:$0xff] }
  0x16   : > { %496 = vmatpush.msra.mxu2 %v338_v17  ;;  %455 = vmatpush.msra.mxu0 %v307_v19  ;;  %v334_v33 = vld [vmem:[%s1555_s3 + $0x130] sm:$0xff]  ;;  %v303_v35 = vld [vmem:[%s1555_s3 + $0x38] sm:$0xff]  ;;  %v320_v36 = vld [vmem:[%s1555_s3 + $0xc0] sm:$0xff] }
  0x17   : > { %516 = vmatpush.msra.mxu3 %v354_v18  ;;  %475 = vmatpush.msra.mxu1 %v323_v24  ;;  %v350_v34 = vld [vmem:[%s1555_s3 + $0x1b0] sm:$0xff]  ;;  %v333_v37 = vld [vmem:[%s1555_s3 + $0x128] sm:$0xff]  ;;  %v319_v40 = vld [vmem:[%s1555_s3 + $0xb8] sm:$0xff] }
  0x18   : > { %497 = vmatpush.msra.mxu2 %v337_v21  ;;  %456 = vmatpush.msra.mxu0 %v306_v23  ;;  %v349_v38 = vld [vmem:[%s1555_s3 + $0x1a8] sm:$0xff]  ;;  %v302_v39 = vld [vmem:[%s1555_s3 + $0x30] sm:$0xff]  ;;  %v332_v41 = vld [vmem:[%s1555_s3 + $0x120] sm:$0xff] }
  0x19   : > { %517 = vmatpush.msra.mxu3 %v353_v22  ;;  %476 = vmatpush.msra.mxu1 %v322_v28  ;;  %v348_v42 = vld [vmem:[%s1555_s3 + $0x1a0] sm:$0xff]  ;;  %v301_v43 = vld [vmem:[%s1555_s3 + $0x28] sm:$0xff]  ;;  %v318_v44 = vld [vmem:[%s1555_s3 + $0xb0] sm:$0xff] }
  0x1a   : > { %498 = vmatpush.msra.mxu2 %v336_v25  ;;  %457 = vmatpush.msra.mxu0 %v305_v27  ;;  %v331_v45 = vld [vmem:[%s1555_s3 + $0x118] sm:$0xff]  ;;  %v300_v47 = vld [vmem:[%s1555_s3 + $0x20] sm:$0xff]  ;;  %v317_v48 = vld [vmem:[%s1555_s3 + $0xa8] sm:$0xff] }
  0x1b   : > { %518 = vmatpush.msra.mxu3 %v352_v26  ;;  %477 = vmatpush.msra.mxu1 %v321_v32  ;;  %v347_v46 = vld [vmem:[%s1555_s3 + $0x198] sm:$0xff]  ;;  %v330_v49 = vld [vmem:[%s1555_s3 + $0x110] sm:$0xff]  ;;  %v316_v52 = vld [vmem:[%s1555_s3 + $0xa0] sm:$0xff] }
  0x1c   : > { %499 = vmatpush.msra.mxu2 %v335_v29  ;;  %458 = vmatpush.msra.mxu0 %v304_v31  ;;  %v346_v50 = vld [vmem:[%s1555_s3 + $0x190] sm:$0xff]  ;;  %v299_v51 = vld [vmem:[%s1555_s3 + $0x18] sm:$0xff]  ;;  %v329_v53 = vld [vmem:[%s1555_s3 + $0x108] sm:$0xff] }
  0x1d   : > { %519 = vmatpush.msra.mxu3 %v351_v30  ;;  %478 = vmatpush.msra.mxu1 %v320_v36  ;;  %v345_v54 = vld [vmem:[%s1555_s3 + $0x188] sm:$0xff]  ;;  %v298_v55 = vld [vmem:[%s1555_s3 + $0x10] sm:$0xff]  ;;  %v315_v56 = vld [vmem:[%s1555_s3 + $0x98] sm:$0xff] }
  0x1e   : > { %500 = vmatpush.msra.mxu2 %v334_v33  ;;  %459 = vmatpush.msra.mxu0 %v303_v35  ;;  %v328_v57 = vld [vmem:[%s1555_s3 + $0x100] sm:$0xff]  ;;  %v407_v59 = vld [vmem:[%s1555_s3 + $0x378] sm:$0xff]  ;;  %v297_v61 = vld [vmem:[%s1555_s3 + $0x8] sm:$0xff] }
  0x1f   : > { %520 = vmatpush.msra.mxu3 %v350_v34  ;;  %479 = vmatpush.msra.mxu1 %v319_v40  ;;  %v344_v58 = vld [vmem:[%s1555_s3 + $0x180] sm:$0xff]  ;;  %v423_v60 = vld [vmem:[%s1555_s3 + $0x3f8] sm:$0xff]  ;;  %v314_v62 = vld [vmem:[%s1555_s3 + $0x90] sm:$0xff] }
  0x20   : > { %501 = vmatpush.msra.mxu2 %v333_v37  ;;  %460 = vmatpush.msra.mxu0 %v302_v39  ;;  %v406_v63 = vld [vmem:[%s1555_s3 + $0x370] sm:$0xff]  ;;  %v296_v1 = vld [vmem:[%s1555_s3] sm:$0xff]  ;;  %v313_v2 = vld [vmem:[%s1555_s3 + $0x88] sm:$0xff] }
  0x21   : > { %521 = vmatpush.msra.mxu3 %v349_v38  ;;  %480 = vmatpush.msra.mxu1 %v318_v44  ;;  %v422_v0 = vld [vmem:[%s1555_s3 + $0x3f0] sm:$0xff]  ;;  %v405_v3 = vld [vmem:[%s1555_s3 + $0x368] sm:$0xff]  ;;  %v375_v5 = vld [vmem:[%s1555_s3 + $0x278] sm:$0xff] }
  0x22   : > { %502 = vmatpush.msra.mxu2 %v332_v41  ;;  %461 = vmatpush.msra.mxu0 %v301_v43  ;;  %v421_v4 = vld [vmem:[%s1555_s3 + $0x3e8] sm:$0xff]  ;;  %v312_v6 = vld [vmem:[%s1555_s3 + $0x80] sm:$0xff]  ;;  %v374_v9 = vld [vmem:[%s1555_s3 + $0x270] sm:$0xff] }
  0x23   : > { %522 = vmatpush.msra.mxu3 %v348_v42  ;;  %481 = vmatpush.msra.mxu1 %v317_v48  ;;  %v404_v7 = vld [vmem:[%s1555_s3 + $0x360] sm:$0xff]  ;;  %v391_v10 = vld [vmem:[%s1555_s3 + $0x2f8] sm:$0xff]  ;;  %v373_v13 = vld [vmem:[%s1555_s3 + $0x268] sm:$0xff] }
  0x24   : > { %503 = vmatpush.msra.mxu2 %v331_v45  ;;  %462 = vmatpush.msra.mxu0 %v300_v47  ;;  %v420_v8 = vld [vmem:[%s1555_s3 + $0x3e0] sm:$0xff]  ;;  %v403_v11 = vld [vmem:[%s1555_s3 + $0x358] sm:$0xff]  ;;  %v390_v14 = vld [vmem:[%s1555_s3 + $0x2f0] sm:$0xff] }
  0x25   : > { %523 = vmatpush.msra.mxu3 %v347_v46  ;;  %482 = vmatpush.msra.mxu1 %v316_v52  ;;  %v419_v12 = vld [vmem:[%s1555_s3 + $0x3d8] sm:$0xff]  ;;  %v293_v15 = vld [vmem:[%s1168_s17 + $0x8] sm:$0xff]  ;;  %v402_v16 = vld [vmem:[%s1555_s3 + $0x350] sm:$0xff] }
  0x26   : > { %504 = vmatpush.msra.mxu2 %v330_v49  ;;  %463 = vmatpush.msra.mxu0 %v299_v51  ;;  %v418_v17 = vld [vmem:[%s1555_s3 + $0x3d0] sm:$0xff]  ;;  %430 = vst [vmem:[#allocation1 + $0x10] ss:$2 sm:$0xff] %v293_v15  ;;  %v372_v18 = vld [vmem:[%s1555_s3 + $0x260] sm:$0xff]  ;;  %v389_v19 = vld [vmem:[%s1555_s3 + $0x2e8] sm:$0xff] }
  0x27   : > { %524 = vmatpush.msra.mxu3 %v346_v50  ;;  %483 = vmatpush.msra.mxu1 %v315_v56  ;;  %v292_v20 = vld [vmem:[%s1168_s17] sm:$0xff]  ;;  %v401_v21 = vld [vmem:[%s1555_s3 + $0x348] sm:$0xff]  ;;  %v371_v23 = vld [vmem:[%s1555_s3 + $0x258] sm:$0xff] }
  0x28   : > { %505 = vmatpush.msra.mxu2 %v329_v53  ;;  %464 = vmatpush.msra.mxu0 %v298_v55  ;;  %v417_v22 = vld [vmem:[%s1555_s3 + $0x3c8] sm:$0xff]  ;;  %428 = vst [vmem:[#allocation1] ss:$2 sm:$0xff] %v292_v20  ;;  %v388_v24 = vld [vmem:[%s1555_s3 + $0x2e0] sm:$0xff]  ;;  %v370_v27 = vld [vmem:[%s1555_s3 + $0x250] sm:$0xff] }
  0x29   : > { %525 = vmatpush.msra.mxu3 %v345_v54  ;;  %484 = vmatpush.msra.mxu1 %v314_v62  ;;  %v400_v25 = vld [vmem:[%s1555_s3 + $0x340] sm:$0xff]  ;;  %v387_v28 = vld [vmem:[%s1555_s3 + $0x2d8] sm:$0xff]  ;;  %v369_v32 = vld [vmem:[%s1555_s3 + $0x248] sm:$0xff] }
  0x2a   : > { %506 = vmatpush.msra.mxu2 %v328_v57  ;;  %465 = vmatpush.msra.mxu0 %v297_v61  ;;  %v416_v26 = vld [vmem:[%s1555_s3 + $0x3c0] sm:$0xff]  ;;  %v295_v29 = vld [vmem:[%s1168_s17 + $0x18] sm:$0xff]  ;;  %v386_v33 = vld [vmem:[%s1555_s3 + $0x2d0] sm:$0xff] }
  0x2b   : > { %526 = vmatpush.msra.mxu3 %v344_v58  ;;  %485 = vmatpush.msra.mxu1 %v313_v2  ;;  %v399_v30 = vld [vmem:[%s1555_s3 + $0x338] sm:$0xff]  ;;  %434 = vst [vmem:[#allocation1 + $0x30] ss:$2 sm:$0xff] %v295_v29  ;;  %v398_v34 = vld [vmem:[%s1555_s3 + $0x330] sm:$0xff]  ;;  %v368_v37 = vld [vmem:[%s1555_s3 + $0x240] sm:$0xff] }
  0x2c   : > { %571 = vmatpush.msrb.mxu2 %v407_v59  ;;  %466 = vmatpush.msra.mxu0 %v296_v1  ;;  %v415_v31 = vld [vmem:[%s1555_s3 + $0x3b8] sm:$0xff]  ;;  %v414_v35 = vld [vmem:[%s1555_s3 + $0x3b0] sm:$0xff]  ;;  %v385_v38 = vld [vmem:[%s1555_s3 + $0x2c8] sm:$0xff] }
  0x2d   : > { %591 = vmatpush.msrb.mxu3 %v423_v60  ;;  %486 = vmatpush.msra.mxu1 %v312_v6  ;;  %v294_v36 = vld [vmem:[%s1168_s17 + $0x10] sm:$0xff]  ;;  %v397_v39 = vld [vmem:[%s1555_s3 + $0x328] sm:$0xff]  ;;  %v367_v41 = vld [vmem:[%s1555_s3 + $0x238] sm:$0xff] }
  0x2e   : > { %572 = vmatpush.msrb.mxu2 %v406_v63  ;;  %531 = vmatpush.msrb.mxu0 %v375_v5  ;;  %v413_v40 = vld [vmem:[%s1555_s3 + $0x3a8] sm:$0xff]  ;;  %432 = vst [vmem:[#allocation1 + $0x20] ss:$2 sm:$0xff] %v294_v36  ;;  %v384_v42 = vld [vmem:[%s1555_s3 + $0x2c0] sm:$0xff]  ;;  %v366_v45 = vld [vmem:[%s1555_s3 + $0x230] sm:$0xff] }
  0x2f   : > { %592 = vmatpush.msrb.mxu3 %v422_v0  ;;  %551 = vmatpush.msrb.mxu1 %v391_v10  ;;  %v396_v43 = vld [vmem:[%s1555_s3 + $0x320] sm:$0xff]  ;;  %v383_v46 = vld [vmem:[%s1555_s3 + $0x2b8] sm:$0xff]  ;;  %v365_v49 = vld [vmem:[%s1555_s3 + $0x228] sm:$0xff] }
  0x30   : > { %573 = vmatpush.msrb.mxu2 %v405_v3  ;;  %532 = vmatpush.msrb.mxu0 %v374_v9  ;;  %v412_v44 = vld [vmem:[%s1555_s3 + $0x3a0] sm:$0xff]  ;;  %v395_v47 = vld [vmem:[%s1555_s3 + $0x318] sm:$0xff]  ;;  %v382_v50 = vld [vmem:[%s1555_s3 + $0x2b0] sm:$0xff] }
  0x31   : > { %593 = vmatpush.msrb.mxu3 %v421_v4  ;;  %552 = vmatpush.msrb.mxu1 %v390_v14  ;;  %v411_v48 = vld [vmem:[%s1555_s3 + $0x398] sm:$0xff]  ;;  %v394_v51 = vld [vmem:[%s1555_s3 + $0x310] sm:$0xff]  ;;  %v364_v54 = vld [vmem:[%s1555_s3 + $0x220] sm:$0xff] }
  0x32   : > { %574 = vmatpush.msrb.mxu2 %v404_v7  ;;  %533 = vmatpush.msrb.mxu0 %v373_v13  ;;  %v410_v52 = vld [vmem:[%s1555_s3 + $0x390] sm:$0xff]  ;;  %v393_v55 = vld [vmem:[%s1555_s3 + $0x308] sm:$0xff]  ;;  %v435_v58 = vld.sshfl [vmem:[#allocation1] sm:$0xff pattern:$0x75316420] }
  0x33   : > { %594 = vmatpush.msrb.mxu3 %v420_v8  ;;  %553 = vmatpush.msrb.mxu1 %v389_v19  ;;  %v437_v53 = vld.sshfl [vmem:[#allocation1 + $0x10] sm:$0xff pattern:$0x75316420]  ;;  %v409_v56 = vld [vmem:[%s1555_s3 + $0x388] sm:$0xff]  ;;  %v392_v59 = vld [vmem:[%s1555_s3 + $0x300] sm:$0xff] }
  0x34   : > { %575 = vmatpush.msrb.mxu2 %v403_v11  ;;  %534 = vmatpush.msrb.mxu0 %v372_v18  ;;  %v381_v57 = vld [vmem:[%s1555_s3 + $0x2a8] sm:$0xff]  ;;  %v408_v60 = vld [vmem:[%s1555_s3 + $0x380] sm:$0xff]  ;;  %v438_v61 = vld.sshfl [vmem:[#allocation1 + $0x18] sm:$0xff pattern:$0x75316420] }
  0x35   : > { %595 = vmatpush.msrb.mxu3 %v419_v12  ;;  %554 = vmatpush.msrb.mxu1 %v388_v24  ;;  %v708_v62 = vld [vmem:[%s1557_s5 + $0x78] sm:$0xff]  ;;  %v380_v1 = vld [vmem:[%s1555_s3 + $0x2a0] sm:$0xff]  ;;  %v707_v2 = vld [vmem:[%s1557_s5 + $0x70] sm:$0xff] }
  0x36   : > { %576 = vmatpush.msrb.mxu2 %v402_v16  ;;  %535 = vmatpush.msrb.mxu0 %v371_v23  ;;  %v724_v63 = vld [vmem:[%s1557_s5 + $0xf8] sm:$0xff]  ;;  %v436_v3 = vld.sshfl [vmem:[#allocation1 + $0x8] sm:$0xff pattern:$0x75316420]  ;;  %v723_v4 = vld [vmem:[%s1557_s5 + $0xf0] sm:$0xff] }
  0x37   : > { %596 = vmatpush.msrb.mxu3 %v418_v17  ;;  %555 = vmatpush.msrb.mxu1 %v387_v28  ;;  %v363_v0 = vld [vmem:[%s1555_s3 + $0x218] sm:$0xff]  ;;  %v362_v5 = vld [vmem:[%s1555_s3 + $0x210] sm:$0xff]  ;;  %v706_v7 = vld [vmem:[%s1557_s5 + $0x68] sm:$0xff] }
  0x38   : > { %577 = vmatpush.msrb.mxu2 %v401_v21  ;;  %536 = vmatpush.msrb.mxu0 %v370_v27  ;;  %v379_v6 = vld [vmem:[%s1555_s3 + $0x298] sm:$0xff]  ;;  %v722_v8 = vld [vmem:[%s1557_s5 + $0xe8] sm:$0xff]  ;;  %v378_v10 = vld [vmem:[%s1555_s3 + $0x290] sm:$0xff] }
  0x39   : > { %597 = vmatpush.msrb.mxu3 %v417_v22  ;;  %556 = vmatpush.msrb.mxu1 %v386_v33  ;;  %v361_v9 = vld [vmem:[%s1555_s3 + $0x208] sm:$0xff]  ;;  %v441_v11 = vld.sshfl [vmem:[#allocation1 + $0x30] sm:$0xff pattern:$0x75316420]  ;;  %v721_v12 = vld [vmem:[%s1557_s5 + $0xe0] sm:$0xff] }
  0x3a   : > { %578 = vmatpush.msrb.mxu2 %v400_v25  ;;  %537 = vmatpush.msrb.mxu0 %v369_v32  ;;  %v705_v13 = vld [vmem:[%s1557_s5 + $0x60] sm:$0xff]  ;;  %v377_v15 = vld [vmem:[%s1555_s3 + $0x288] sm:$0xff]  ;;  %v442_v17 = vld.sshfl [vmem:[#allocation1 + $0x38] sm:$0xff pattern:$0x75316420] }
  0x3b   : > { %598 = vmatpush.msrb.mxu3 %v416_v26  ;;  %557 = vmatpush.msrb.mxu1 %v385_v38  ;;  %v360_v14 = vld [vmem:[%s1555_s3 + $0x200] sm:$0xff]  ;;  %v704_v18 = vld [vmem:[%s1557_s5 + $0x58] sm:$0xff]  ;;  %v440_v21 = vld.sshfl [vmem:[#allocation1 + $0x28] sm:$0xff pattern:$0x75316420] }
  0x3c   : > { %579 = vmatpush.msrb.mxu2 %v399_v30  ;;  %538 = vmatpush.msrb.mxu0 %v368_v37  ;;  %v439_v16 = vld.sshfl [vmem:[#allocation1 + $0x20] sm:$0xff pattern:$0x75316420]  ;;  %v720_v19 = vld [vmem:[%s1557_s5 + $0xd8] sm:$0xff]  ;;  %v703_v22 = vld [vmem:[%s1557_s5 + $0x50] sm:$0xff] }
  0x3d   : > { %599 = vmatpush.msrb.mxu3 %v415_v31  ;;  %558 = vmatpush.msrb.mxu1 %v384_v42  ;;  %v376_v20 = vld [vmem:[%s1555_s3 + $0x280] sm:$0xff]  ;;  %v719_v23 = vld [vmem:[%s1557_s5 + $0xd0] sm:$0xff]  ;;  %v630_v24 = vld [vmem:[%s1556_s4 + $0x78] sm:$0xff] }
  0x3e   : > { %580 = vmatpush.msrb.mxu2 %v398_v34  ;;  %539 = vmatpush.msrb.mxu0 %v367_v41  ;;  %v702_v25 = vld [vmem:[%s1557_s5 + $0x48] sm:$0xff]  ;;  %v646_v26 = vld [vmem:[%s1556_s4 + $0xf8] sm:$0xff]  ;;  %v629_v28 = vld [vmem:[%s1556_s4 + $0x70] sm:$0xff] }
  0x3f   : > { %600 = vmatpush.msrb.mxu3 %v414_v35  ;;  %559 = vmatpush.msrb.mxu1 %v383_v46  ;;  %v718_v27 = vld [vmem:[%s1557_s5 + $0xc8] sm:$0xff]  ;;  %v701_v29 = vld [vmem:[%s1557_s5 + $0x40] sm:$0xff]  ;;  %v645_v30 = vld [vmem:[%s1556_s4 + $0xf0] sm:$0xff] }
  0x40   : > { %581 = vmatpush.msrb.mxu2 %v397_v39  ;;  %540 = vmatpush.msrb.mxu0 %v366_v45  ;;  %v717_v31 = vld [vmem:[%s1557_s5 + $0xc0] sm:$0xff]  ;;  %v628_v32 = vld [vmem:[%s1556_s4 + $0x68] sm:$0xff]  ;;  %v700_v33 = vld [vmem:[%s1557_s5 + $0x38] sm:$0xff] }
  0x41   : > { %601 = vmatpush.msrb.mxu3 %v413_v40  ;;  %560 = vmatpush.msrb.mxu1 %v382_v50  ;;  %v644_v34 = vld [vmem:[%s1556_s4 + $0xe8] sm:$0xff]  ;;  %v716_v35 = vld [vmem:[%s1557_s5 + $0xb8] sm:$0xff]  ;;  %v627_v36 = vld [vmem:[%s1556_s4 + $0x60] sm:$0xff] }
  0x42   : > { %582 = vmatpush.msrb.mxu2 %v396_v43  ;;  %541 = vmatpush.msrb.mxu0 %v365_v49  ;;  %v699_v37 = vld [vmem:[%s1557_s5 + $0x30] sm:$0xff]  ;;  %v643_v38 = vld [vmem:[%s1556_s4 + $0xe0] sm:$0xff]  ;;  %v626_v40 = vld [vmem:[%s1556_s4 + $0x58] sm:$0xff] }
  0x43   : > { %602 = vmatpush.msrb.mxu3 %v412_v44  ;;  %507 = vmatmul.f32.vlgmr.msra.gmra.mxu2 %v437_v53  ;;  %v715_v39 = vld [vmem:[%s1557_s5 + $0xb0] sm:$0xff]  ;;  %v698_v41 = vld [vmem:[%s1557_s5 + $0x28] sm:$0xff]  ;;  %v642_v42 = vld [vmem:[%s1556_s4 + $0xd8] sm:$0xff] }
  0x44   : > { %583 = vmatpush.msrb.mxu2 %v395_v47  ;;  %542 = vmatpush.msrb.mxu0 %v364_v54  ;;  %v714_v43 = vld [vmem:[%s1557_s5 + $0xa8] sm:$0xff]  ;;  %v625_v44 = vld [vmem:[%s1556_s4 + $0x50] sm:$0xff]  ;;  %v697_v45 = vld [vmem:[%s1557_s5 + $0x20] sm:$0xff] }
  0x45   : > { %603 = vmatpush.msrb.mxu3 %v411_v48  ;;  %561 = vmatpush.msrb.mxu1 %v381_v57  ;;  %v641_v46 = vld [vmem:[%s1556_s4 + $0xd0] sm:$0xff]  ;;  %v713_v47 = vld [vmem:[%s1557_s5 + $0xa0] sm:$0xff]  ;;  %v624_v48 = vld [vmem:[%s1556_s4 + $0x48] sm:$0xff] }
  0x46   : > { %584 = vmatpush.msrb.mxu2 %v394_v51  ;;  %467 = vmatmul.f32.vlgmr.msra.gmra.mxu0 %v435_v58  ;;  %v696_v49 = vld [vmem:[%s1557_s5 + $0x18] sm:$0xff]  ;;  %v640_v50 = vld [vmem:[%s1556_s4 + $0xc8] sm:$0xff]  ;;  %v695_v53 = vld [vmem:[%s1557_s5 + $0x10] sm:$0xff] }
  0x47   : > { %604 = vmatpush.msrb.mxu3 %v410_v52  ;;  %543 = vmatpush.msrb.mxu0 %v363_v0  ;;  %v712_v51 = vld [vmem:[%s1557_s5 + $0x98] sm:$0xff]  ;;  %v623_v52 = vld [vmem:[%s1556_s4 + $0x40] sm:$0xff]  ;;  %v694_v57 = vld [vmem:[%s1557_s5 + $0x8] sm:$0xff] }
  0x48   : > { %585 = vmatpush.msrb.mxu2 %v393_v55  ;;  %527 = vmatmul.f32.vlgmr.msra.gmra.mxu3 %v438_v61  ;;  %v639_v54 = vld [vmem:[%s1556_s4 + $0xc0] sm:$0xff]  ;;  %v711_v55 = vld [vmem:[%s1557_s5 + $0x90] sm:$0xff]  ;;  %v638_v58 = vld [vmem:[%s1556_s4 + $0xb8] sm:$0xff] }
  0x49   : > { %605 = vmatpush.msrb.mxu3 %v409_v56  ;;  %562 = vmatpush.msrb.mxu1 %v380_v1  ;;  %v622_v56 = vld [vmem:[%s1556_s4 + $0x38] sm:$0xff]  ;;  %v693_v61 = vld [vmem:[%s1557_s5] sm:$0xff]  ;;  %v690_v1 = vld [vmem:[%s1484_s15 + $0x8] sm:$0xff] }
  0x4a   : > { %586 = vmatpush.msrb.mxu2 %v392_v59  ;;  %487 = vmatmul.f32.vlgmr.msra.gmra.mxu1 %v436_v3  ;;  %v710_v59 = vld [vmem:[%s1557_s5 + $0x88] sm:$0xff]  ;;  %v689_v0 = vld [vmem:[%s1484_s15] sm:$0xff] }
  0x4b   : > { %606 = vmatpush.msrb.mxu3 %v408_v60  ;;  %544 = vmatpush.msrb.mxu0 %v362_v5  ;;  %v621_v60 = vld [vmem:[%s1556_s4 + $0x30] sm:$0xff]  ;;  %v636_v3 = vld [vmem:[%s1556_s4 + $0xa8] sm:$0xff]  ;;  %v635_v5 = vld [vmem:[%s1556_s4 + $0xa0] sm:$0xff] }
  0x4c   : > { %725 = vmatpush.msra.mxu2 %v708_v62  ;;  %563 = vmatpush.msrb.mxu1 %v379_v6  ;;  %v637_v62 = vld [vmem:[%s1556_s4 + $0xb0] sm:$0xff]  ;;  %v618_v6 = vld [vmem:[%s1556_s4 + $0x18] sm:$0xff] }
  0x4d   : > { %748 = vmatpush.msra.mxu3 %v724_v63  ;;  %545 = vmatpush.msrb.mxu0 %v361_v9  ;;  %v709_v63 = vld [vmem:[%s1557_s5 + $0x80] sm:$0xff]  ;;  %v691_v9 = vld [vmem:[%s1484_s15 + $0x10] sm:$0xff] }
  0x4e   : > { %726 = vmatpush.msra.mxu2 %v707_v2  ;;  %564 = vmatpush.msrb.mxu1 %v378_v10  ;;  %v620_v2 = vld [vmem:[%s1556_s4 + $0x28] sm:$0xff]  ;;  %v633_v10 = vld [vmem:[%s1556_s4 + $0x90] sm:$0xff] }
  0x4f   : > { %749 = vmatpush.msra.mxu3 %v723_v4  ;;  %587 = vmatmul.f32.vlgmr.msrb.gmra.mxu2 %v441_v11  ;;  %v619_v4 = vld [vmem:[%s1556_s4 + $0x20] sm:$0xff]  ;;  %v692_v11 = vld [vmem:[%s1484_s15 + $0x18] sm:$0xff] }
  0x50   : > { %727 = vmatpush.msra.mxu2 %v706_v7  ;;  %546 = vmatpush.msrb.mxu0 %v360_v14  ;;  %v634_v7 = vld [vmem:[%s1556_s4 + $0x98] sm:$0xff]  ;;  %v615_v14 = vld [vmem:[%s1556_s4] sm:$0xff] }
  0x51   : > { %750 = vmatpush.msra.mxu3 %v722_v8  ;;  %565 = vmatpush.msrb.mxu1 %v377_v15  ;;  %v617_v8 = vld [vmem:[%s1556_s4 + $0x10] sm:$0xff]  ;;  %v631_v15 = vld [vmem:[%s1556_s4 + $0x80] sm:$0xff] }
  0x52   : > { %728 = vmatpush.msra.mxu2 %v705_v13  ;;  %547 = vmatmul.f32.vlgmr.msrb.gmra.mxu0 %v439_v16  ;;  %v632_v13 = vld [vmem:[%s1556_s4 + $0x88] sm:$0xff]  ;;  %v613_v16 = vld [vmem:[%s281_s22] sm:$0xff] }
  0x53   : > { %751 = vmatpush.msra.mxu3 %v721_v12  ;;  %566 = vmatpush.msrb.mxu1 %v376_v20  ;;  %v616_v12 = vld [vmem:[%s1556_s4 + $0x8] sm:$0xff] }
  0x54   : > { %607 = vmatmul.f32.vlgmr.msrb.gmra.mxu3 %v442_v17  ;;  %729 = vmatpush.msra.mxu2 %v704_v18  ;;  %v614_v17 = vld [vmem:[%s281_s22 + $0x8] sm:$0xff] }
  0x55   : > { %752 = vmatpush.msra.mxu3 %v720_v19  ;;  %567 = vmatmul.f32.vlgmr.msrb.gmra.mxu1 %v440_v21 }
  0x56   : > { %730 = vmatpush.msra.mxu2 %v703_v22  ;;  %647 = vmatpush.msra.mxu0 %v630_v24 }
  0x57   : > { %753 = vmatpush.msra.mxu3 %v719_v23  ;;  %667 = vmatpush.msra.mxu1 %v646_v26 }
  0x58   : > { %731 = vmatpush.msra.mxu2 %v702_v25  ;;  %648 = vmatpush.msra.mxu0 %v629_v28 }
  0x59   : > { %754 = vmatpush.msra.mxu3 %v718_v27  ;;  %668 = vmatpush.msra.mxu1 %v645_v30 }
  0x5a   : > { %732 = vmatpush.msra.mxu2 %v701_v29  ;;  %649 = vmatpush.msra.mxu0 %v628_v32 }
  0x5b   : > { %755 = vmatpush.msra.mxu3 %v717_v31  ;;  %669 = vmatpush.msra.mxu1 %v644_v34 }
  0x5c   : > { %733 = vmatpush.msra.mxu2 %v700_v33  ;;  %650 = vmatpush.msra.mxu0 %v627_v36 }
  0x5d   : > { %756 = vmatpush.msra.mxu3 %v716_v35  ;;  %670 = vmatpush.msra.mxu1 %v643_v38 }
  0x5e   : > { %734 = vmatpush.msra.mxu2 %v699_v37  ;;  %651 = vmatpush.msra.mxu0 %v626_v40 }
  0x5f   : > { %757 = vmatpush.msra.mxu3 %v715_v39  ;;  %671 = vmatpush.msra.mxu1 %v642_v42 }
  0x60   : > { %735 = vmatpush.msra.mxu2 %v698_v41  ;;  %652 = vmatpush.msra.mxu0 %v625_v44 }
  0x61   : > { %758 = vmatpush.msra.mxu3 %v714_v43  ;;  %672 = vmatpush.msra.mxu1 %v641_v46 }
  0x62   : > { %736 = vmatpush.msra.mxu2 %v697_v45  ;;  %653 = vmatpush.msra.mxu0 %v624_v48 }
  0x63   : > { %759 = vmatpush.msra.mxu3 %v713_v47  ;;  %673 = vmatpush.msra.mxu1 %v640_v50 }
  0x64   : > { %737 = vmatpush.msra.mxu2 %v696_v49  ;;  %654 = vmatpush.msra.mxu0 %v623_v52 }
  0x65   : > { %760 = vmatpush.msra.mxu3 %v712_v51  ;;  %674 = vmatpush.msra.mxu1 %v639_v54 }
  0x66   : > { %738 = vmatpush.msra.mxu2 %v695_v53  ;;  %655 = vmatpush.msra.mxu0 %v622_v56 }
  0x67   : > { %761 = vmatpush.msra.mxu3 %v711_v55  ;;  %675 = vmatpush.msra.mxu1 %v638_v58 }
  0x68   : > { %739 = vmatpush.msra.mxu2 %v694_v57  ;;  %656 = vmatpush.msra.mxu0 %v621_v60 }
  0x69   : > { %762 = vmatpush.msra.mxu3 %v710_v59  ;;  %676 = vmatpush.msra.mxu1 %v637_v62 }
  0x6a   : > { %740 = vmatpush.msra.mxu2 %v693_v61  ;;  %657 = vmatpush.msra.mxu0 %v620_v2 }
  0x6b   : > { %763 = vmatpush.msra.mxu3 %v709_v63  ;;  %741 = vmatmul.f32.vlgmr.msra.gmra.mxu2 %v689_v0 }
  0x6c   : > { %764 = vmatmul.f32.vlgmr.msra.gmra.mxu3 %v690_v1  ;;  %677 = vmatpush.msra.mxu1 %v636_v3 }
  0x6d   : > { %658 = vmatpush.msra.mxu0 %v619_v4 }
  0x6e   : > { %678 = vmatpush.msra.mxu1 %v635_v5 }
  0x6f   : > { %659 = vmatpush.msra.mxu0 %v618_v6 }
  0x70   : > { %679 = vmatpush.msra.mxu1 %v634_v7 }
  0x71   : > { %660 = vmatpush.msra.mxu0 %v617_v8 }
  0x72   : > { %680 = vmatpush.msra.mxu1 %v633_v10 }
  0x73   : > { %744 = vmatmul.f32.gmra.mxu2 %v691_v9  ;;  %661 = vmatpush.msra.mxu0 %v616_v12 }
  0x74   : > { %767 = vmatmul.f32.gmra.mxu3 %v692_v11  ;;  %681 = vmatpush.msra.mxu1 %v632_v13 }
  0x75   : > { %662 = vmatpush.msra.mxu0 %v615_v14 }
  0x76   : > { %682 = vmatpush.msra.mxu1 %v631_v15  ;;  %663 = vmatmul.f32.vlgmr.msra.gmra.mxu0 %v613_v16 }
  0x77   : > { %683 = vmatmul.f32.vlgmr.msra.gmra.mxu1 %v614_v17 }
  0xc3   : > { %v468_v18 = vpop.f32.mrf.mxu0 }
  0xc6   : > { %v508_v20 = vpop.f32.mrf.mxu2 }
  0xc7   : > { %v488_v19 = vpop.f32.mrf.mxu1 }
  0xc8   : > { %v489_v21 = vadd.f32 %v488_v19, %v468_v18 }
  0xca   : > { %v509_v22 = vadd.f32 %v508_v20, %v489_v21 }
  0xcb   : > { %v528_v23 = vpop.f32.mrf.mxu3 }
  0xcc   : > { %v529_v24 = vadd.f32 %v528_v23, %v509_v22 }
  0xcf   : > { %v548_v25 = vpop.f32.mrf.mxu0 }
  0xd0   : > { %v549_v26 = vadd.f32 %v548_v25, %v529_v24 }
  0xd2   : > { %v568_v27 = vpop.f32.mrf.mxu1  ;;  %v588_v29 = vpop.f32.mrf.mxu2 }
  0xd3   : > { %v569_v28 = vadd.f32 %v568_v27, %v549_v26 }
  0xd5   : > { %v589_v30 = vadd.f32 %v588_v29, %v569_v28 }
  0xd7   : > { %v608_v31 = vpop.f32.mrf.mxu3 }
  0xd8   : > { %v609_v32 = vadd.f32 %v608_v31, %v589_v30 }
  0xda   : > { %612 = vst.msk [vmem:[%s291_s14] sm:$0xf] %vm611_vm0, %v609_v32 }
  0xee   : > { %v742_v33 = vpop.f32.mrf.mxu2 }
  0xef   : > { %v765_v34 = vpop.f32.mrf.mxu3 }
  0xf0   : > { %v766_v35 = vadd.f32 %v765_v34, %v742_v33 }
  0xf2   : > { %771 = vst.msk [vmem:[%s291_s14 + $0xc] sm:$0xff] %vm687_vm1, %v766_v35 }
  0xf3   : > { %v664_v36 = vpop.f32.mrf.mxu0 }
  0xf4   : > { %v684_v37 = vpop.f32.mrf.mxu1 }
  0xf5   : > { %v685_v38 = vadd.f32 %v684_v37, %v664_v36 }
  0xf6   : > { %v745_v39 = vpop.f32.mrf.mxu2 }
  0xf7   : > { %v768_v40 = vpop.f32.mrf.mxu3  ;;  %688 = vst.msk [vmem:[%s291_s14 + $0x4] sm:$0xff] %vm687_vm1, %v685_v38 }
  0xf8   : > { %v769_v41 = vadd.f32 %v768_v40, %v745_v39 }
  0xfa   : > { %772 = vst.msk [vmem:[%s291_s14 + $0x14] sm:$0xff] %vm687_vm1, %v769_v41 }
  0xfb PF: > { %s16_s21 = sadd.s32 1, %s885_s21  }
  0xfc   : > { %p13_p4 = scmp.ge.s32.totalorder %s16_s21, 4  }
  0xfe   :  { %15 = sbr.rel (!%p13_p4) target bundleno = 1 (0x1), region = 83 }

</bundles_post_ra>
